<compile_context>
chip_gen: v5e
topology: v5e:2x2
jax: 0.10.0
libtpu: 0.0.40
codegen_flags: <defaults>
</compile_context>

<pallas_src>
import functools

import jax
import jax.numpy as jnp
from jax import lax
from jax.experimental import pallas as pl
from jax.experimental.pallas import tpu as pltpu

EPS = 1e-5
_LANE = 128
_F32 = 4


def _round_up(x, m):
    return (x + m - 1) // m * m


def _tpu_budgets():
    """Generation-aware (vmem_limit_bytes, per-step block budget, multi_tc)."""
    cap = 64 * 1024 * 1024                       # conservative default (v7x)
    try:
        info = pltpu.get_tpu_info()
        cap = int(getattr(info, "vmem_capacity_bytes", cap))
    except Exception:
        pass
    if cap >= 128 * 1024 * 1024:                 # v5e / v6e: 128 MiB, 1 TC
        return 96 * 1024 * 1024, 64 * 1024 * 1024, False
    # v7x-class part: 64 MiB VMEM per TC, 2 TCs per chip (megacore).
    return 52 * 1024 * 1024, 28 * 1024 * 1024, True


# ---------------------------------------------------------------------------
# Path A: small/medium N — single fused pass over full-height [N, tf] slabs.
# ---------------------------------------------------------------------------
def _bn_fused_kernel(x_ref, w_ref, b_ref, o_ref):
    x = x_ref[...].astype(jnp.float32)                        # [N, tf]
    inv_n = jnp.float32(1.0 / x.shape[0])
    mean = jnp.sum(x, axis=0, keepdims=True) * inv_n          # [1, tf]
    d = x - mean
    var = jnp.sum(d * d, axis=0, keepdims=True) * inv_n       # biased variance
    scale = w_ref[...] * lax.rsqrt(var + EPS)
    o_ref[...] = (d * scale + b_ref[...]).astype(o_ref.dtype)


# ---------------------------------------------------------------------------
# Path B: large N — pass 1 accumulates shifted per-feature sufficient stats
# over row tiles (row axis last, "arbitrary"); pass 2 normalizes row tiles
# with scale/shift computed in-kernel (fully parallel).
# ---------------------------------------------------------------------------
def _bn_stats_kernel(x_ref, x0_ref, s1_ref, s2_ref, *, n_rows, tr, mask_rows):
    r = pl.program_id(1)

    @pl.when(r == 0)
    def _():
        s1_ref[...] = jnp.zeros_like(s1_ref)
        s2_ref[...] = jnp.zeros_like(s2_ref)

    # Shifted sufficient statistics (relative to the first data row) keep
    # E[x^2]-E[x]^2 well conditioned when |mean| >> std.  f32 accumulation
    # across row tiles is adequate for realistic N here.
    x = x_ref[...].astype(jnp.float32) - x0_ref[...]           # [tr, tf]
    if mask_rows:                                              # ragged last tile
        rows = lax.broadcasted_iota(jnp.int32, x.shape, 0)
        x = jnp.where(rows < (n_rows - r * tr), x, 0.0)        # drop OOB rows
    s1_ref[...] += jnp.sum(x, axis=0, keepdims=True)
    s2_ref[...] += jnp.sum(x * x, axis=0, keepdims=True)


def _bn_norm_kernel(x_ref, s1_ref, s2_ref, x0_ref, w_ref, b_ref, o_ref, *, inv_n):
    # Per-feature scale/shift recomputed in-kernel: a few vregs per tile and
    # it removes the extra XLA dispatch between the two pallas_calls.
    m_s = s1_ref[...] * inv_n                                  # shifted mean
    var = jnp.maximum(s2_ref[...] * inv_n - m_s * m_s, 0.0)
    mean = x0_ref[...] + m_s
    scale = w_ref[...] * lax.rsqrt(var + EPS)
    shift = b_ref[...] - mean * scale
    x = x_ref[...].astype(jnp.float32)
    o_ref[...] = (x * scale + shift).astype(o_ref.dtype)


# ---------------------------------------------------------------------------
# Tile selection helpers.
# ---------------------------------------------------------------------------
def _feature_tiles(C):
    """Multiples of 128 that evenly tile C (empty if C is not 128-aligned)."""
    if C % _LANE:
        return []
    return [c for c in range(_LANE, C + 1, _LANE) if C % c == 0]


def _choose_tf_one_pass(C, N, ib, budget, slab_bytes):
    cands = _feature_tiles(C) or [C]          # ragged C -> single full-C block
    fitting = [c for c in cands if slab_bytes(c) <= budget]
    if not fitting:
        return None
    # Prefer >= 4 pipelined grid steps (>= 2 per TC on v7x) while each column
    # slab still moves >= ~1 MiB so prefetch(i+1)/writeback(i-1) overlap is
    # not wasted; tiny inputs fall back to the largest fitting tile (they are
    # launch-overhead bound anyway).
    for min_steps in (4, 2):
        for c in sorted(fitting, reverse=True):
            if C // c >= min_steps and N * c * ib >= (1 << 20):
                return c
    return max(fitting)


def _choose_tf_two_pass(C, ib, budget, multi_tc):
    cands = _feature_tiles(C)
    if not cands:
        return C                              # ragged C -> single full-C block
    per_row = lambda c: c * (4 * ib + 2 * _F32)
    # Keep tr >= 512 rows feasible inside the budget (85%+ HBM-roofline blocks).
    ok = [c for c in cands if budget // per_row(c) >= 512] or [_LANE]
    tf = max(ok)
    if multi_tc and C // tf < 2:
        # v7x: >= 2 parallel feature steps so the 2nd TensorCore isn't idle
        # during the HBM-read-bound stats pass.
        two_plus = ([c for c in ok if C // c >= 2]
                    or [c for c in cands if C // c >= 2])
        if two_plus:
            tf = max(two_plus)
    return tf


# ---------------------------------------------------------------------------
# Driver.
# ---------------------------------------------------------------------------
def _batchnorm_2d(x2d, weight, bias, *, force_two_pass):
    N, C = x2d.shape
    in_dt = x2d.dtype
    ib = jnp.dtype(in_dt).itemsize
    vmem_limit, budget, multi_tc = _tpu_budgets()

    w2d = weight.reshape(1, C).astype(jnp.float32)
    b2d = bias.reshape(1, C).astype(jnp.float32)

    # Per-step VMEM for a full-height column slab: double-buffered input and
    # output blocks plus two live f32 working slabs inside the kernel.
    def slab_bytes(tf):
        return N * tf * (2 * ib + 2 * ib + 2 * _F32)

    tf_one = None if force_two_pass else _choose_tf_one_pass(C, N, ib, budget,
                                                             slab_bytes)

    if tf_one is not None:
        tf = tf_one
        return pl.pallas_call(
            _bn_fused_kernel,
            out_shape=jax.ShapeDtypeStruct((N, C), in_dt),
            grid_spec=pltpu.PrefetchScalarGridSpec(
                num_scalar_prefetch=0,
                grid=(C // tf,),
                in_specs=[
                    pl.BlockSpec((N, tf), lambda j: (0, j)),   # x column slab
                    pl.BlockSpec((1, tf), lambda j: (0, j)),   # weight
                    pl.BlockSpec((1, tf), lambda j: (0, j)),   # bias
                ],
                out_specs=pl.BlockSpec((N, tf), lambda j: (0, j)),
            ),
            compiler_params=pltpu.CompilerParams(
                dimension_semantics=("parallel",),
                vmem_limit_bytes=vmem_limit,
            ),
        )(x2d, w2d, b2d)

    # ---------------- two-pass, row-tiled path ----------------
    tf = _choose_tf_two_pass(C, ib, budget, multi_tc)
    per_row_bytes = tf * (4 * ib + 2 * _F32)
    tr = (budget // per_row_bytes) // _LANE * _LANE
    tr = max(_LANE, min(tr, 2048, _round_up(N, _LANE)))
    nr = pl.cdiv(N, tr)
    nf = pl.cdiv(C, tf)
    mask_rows = (N % tr) != 0          # ragged last row tile -> mask OOB rows

    # Shift row for numerically stable sufficient statistics (tiny [1, C]).
    x0 = x2d[:1].astype(jnp.float32)

    # Pass 1: per-feature shifted sum / sum-of-squares (rows = reduction axis).
    s1, s2 = pl.pallas_call(
        functools.partial(_bn_stats_kernel, n_rows=N, tr=tr, mask_rows=mask_rows),
        out_shape=(
            jax.ShapeDtypeStruct((1, C), jnp.float32),
            jax.ShapeDtypeStruct((1, C), jnp.float32),
        ),
        grid_spec=pltpu.PrefetchScalarGridSpec(
            num_scalar_prefetch=0,
            grid=(nf, nr),                               # reduction (rows) last
            in_specs=[
                pl.BlockSpec((tr, tf), lambda j, r: (r, j)),
                pl.BlockSpec((1, tf), lambda j, r: (0, j)),
            ],
            out_specs=(
                pl.BlockSpec((1, tf), lambda j, r: (0, j)),
                pl.BlockSpec((1, tf), lambda j, r: (0, j)),
            ),
        ),
        compiler_params=pltpu.CompilerParams(
            dimension_semantics=("parallel", "arbitrary"),
            vmem_limit_bytes=vmem_limit,
        ),
    )(x2d, x0)

    # Pass 2: fully parallel normalize; scale/shift computed in-kernel.
    return pl.pallas_call(
        functools.partial(_bn_norm_kernel, inv_n=float(1.0 / N)),
        out_shape=jax.ShapeDtypeStruct((N, C), in_dt),
        grid_spec=pltpu.PrefetchScalarGridSpec(
            num_scalar_prefetch=0,
            grid=(nr, nf),
            in_specs=[
                pl.BlockSpec((tr, tf), lambda i, j: (i, j)),
                pl.BlockSpec((1, tf), lambda i, j: (0, j)),   # s1
                pl.BlockSpec((1, tf), lambda i, j: (0, j)),   # s2
                pl.BlockSpec((1, tf), lambda i, j: (0, j)),   # x0
                pl.BlockSpec((1, tf), lambda i, j: (0, j)),   # weight
                pl.BlockSpec((1, tf), lambda i, j: (0, j)),   # bias
            ],
            out_specs=pl.BlockSpec((tr, tf), lambda i, j: (i, j)),
        ),
        compiler_params=pltpu.CompilerParams(
            dimension_semantics=("parallel", "parallel"),
            vmem_limit_bytes=vmem_limit,
        ),
    )(x2d, s1, s2, x0, w2d, b2d)


@functools.partial(jax.jit, static_argnames=("force_two_pass",))
def batch_norm(h, weight, bias, *, force_two_pass=False):
    """Pallas BatchNorm1d over the last axis of `h` (training-mode stats)."""
    orig_shape = h.shape
    C = orig_shape[-1]
    x2d = h.reshape(-1, C)
    out2d = _batchnorm_2d(x2d, weight, bias, force_two_pass=force_two_pass)
    return out2d.reshape(orig_shape)


def _reference(h, weight, bias):
    """Pure-JAX reference matching PyTorch BatchNorm1d training forward."""
    C = h.shape[-1]
    x = h.reshape(-1, C).astype(jnp.float32)
    mean = jnp.mean(x, axis=0, keepdims=True)
    var = jnp.mean((x - mean) ** 2, axis=0, keepdims=True)     # biased variance
    y = (x - mean) / jnp.sqrt(var + EPS) * weight.reshape(1, C) + bias.reshape(1, C)
    return y.astype(h.dtype).reshape(h.shape)


if __name__ == "__main__":
    key = jax.random.PRNGKey(0)
    k1, k2, k3, k4 = jax.random.split(key, 4)

    # Shapes consistent with TimeATCritic.final (MLP hidden width = 256).
    batch, seq, hidden = 2, 8, 256
    x = jax.random.normal(k1, (batch, seq, hidden), dtype=jnp.float32)
    weight = jnp.ones((hidden,), dtype=jnp.float32)            # BatchNorm1d init
    bias = jnp.zeros((hidden,), dtype=jnp.float32)

    out = jax.block_until_ready(batch_norm(x, weight, bias))
    ref = _reference(x, weight, bias)
    assert out.shape == x.shape and out.dtype == x.dtype
    assert jnp.max(jnp.abs(out - ref)) < 1e-4, "mismatch vs reference (path A)"

    # Exercise the two-pass path: ragged feature width (C % 128 != 0), ragged
    # last row tile (masked stats), multi-row-tile accumulation, shifted stats
    # (mean offset from zero). No padding / slicing happens around the kernels.
    n_rows, feat = 2500, 200
    x2 = 1.0 + 0.5 * jax.random.normal(k2, (n_rows, feat), dtype=jnp.float32)
    w2 = jax.random.normal(k3, (feat,), dtype=jnp.float32)
    b2 = jax.random.normal(k4, (feat,), dtype=jnp.float32)
    out2 = jax.block_until_ready(batch_norm(x2, w2, b2, force_two_pass=True))
    ref2 = _reference(x2, w2, b2)
    assert out2.shape == x2.shape and out2.dtype == x2.dtype
    assert jnp.max(jnp.abs(out2 - ref2)) < 5e-4, "mismatch vs reference (path B)"

    print("KERNEL_OK")
</pallas_src>

<mosaic_0001>
module attributes {stable_mosaic.version = 11 : i64} {
  func.func @_bn_fused_kernel(%arg0: i32, %arg1: memref<16x256xf32, #tpu.memory_space<vmem>>, %arg2: memref<1x256xf32, #tpu.memory_space<vmem>>, %arg3: memref<1x256xf32, #tpu.memory_space<vmem>>, %arg4: memref<16x256xf32, #tpu.memory_space<vmem>>) attributes {dimension_semantics = [#tpu.dimension_semantics<parallel>], iteration_bounds = array<i64: 1>, scalar_prefetch = 0 : i64, scratch_operands = 0 : i64, tpu.core_type = #tpu.core_type<tc>, window_params = [{transform_indices = @transform_0, window_bounds = array<i64: 16, 256>}, {transform_indices = @transform_1, window_bounds = array<i64: 1, 256>}, {transform_indices = @transform_2, window_bounds = array<i64: 1, 256>}, {transform_indices = @transform_3, window_bounds = array<i64: 16, 256>}]} {
    %c0 = arith.constant 0 : index
    %c0_0 = arith.constant 0 : index
    %0 = vector.load %arg1[%c0, %c0_0] : memref<16x256xf32, #tpu.memory_space<vmem>>, vector<16x256xf32>
    %cst = arith.constant dense<0.000000e+00> : vector<256xf32>
    %1 = vector.multi_reduction <add>, %0, %cst [0] : vector<16x256xf32> to vector<256xf32>
    %2 = vector.shape_cast %1 : vector<256xf32> to vector<1x256xf32>
    %cst_1 = arith.constant 6.250000e-02 : f32
    %3 = vector.broadcast %cst_1 : f32 to vector<1x256xf32>
    %4 = arith.mulf %2, %3 : vector<1x256xf32>
    %5 = vector.broadcast %4 : vector<1x256xf32> to vector<16x256xf32>
    %6 = arith.subf %0, %5 : vector<16x256xf32>
    %7 = arith.mulf %6, %6 : vector<16x256xf32>
    %cst_2 = arith.constant dense<0.000000e+00> : vector<256xf32>
    %8 = vector.multi_reduction <add>, %7, %cst_2 [0] : vector<16x256xf32> to vector<256xf32>
    %9 = vector.shape_cast %8 : vector<256xf32> to vector<1x256xf32>
    %cst_3 = arith.constant 6.250000e-02 : f32
    %10 = vector.broadcast %cst_3 : f32 to vector<1x256xf32>
    %11 = arith.mulf %9, %10 : vector<1x256xf32>
    %c0_4 = arith.constant 0 : index
    %c0_5 = arith.constant 0 : index
    %12 = vector.load %arg2[%c0_4, %c0_5] : memref<1x256xf32, #tpu.memory_space<vmem>>, vector<1x256xf32>
    %cst_6 = arith.constant 9.99999974E-6 : f32
    %13 = vector.broadcast %cst_6 : f32 to vector<1x256xf32>
    %14 = arith.addf %11, %13 : vector<1x256xf32>
    %15 = math.rsqrt %14 : vector<1x256xf32>
    %16 = arith.mulf %12, %15 : vector<1x256xf32>
    %17 = vector.broadcast %16 : vector<1x256xf32> to vector<16x256xf32>
    %18 = arith.mulf %6, %17 : vector<16x256xf32>
    %c0_7 = arith.constant 0 : index
    %c0_8 = arith.constant 0 : index
    %19 = vector.load %arg3[%c0_7, %c0_8] : memref<1x256xf32, #tpu.memory_space<vmem>>, vector<1x256xf32>
    %20 = vector.broadcast %19 : vector<1x256xf32> to vector<16x256xf32>
    %21 = arith.addf %18, %20 : vector<16x256xf32>
    %c0_9 = arith.constant 0 : index
    %c0_10 = arith.constant 0 : index
    %22 = vector.load %arg4[%c0_9, %c0_10] : memref<16x256xf32, #tpu.memory_space<vmem>>, vector<16x256xf32>
    tpu.vector_store %arg4[%c0_9, %c0_10], %21 {strides = array<i32>} : memref<16x256xf32, #tpu.memory_space<vmem>>, vector<16x256xf32>,
    return
  }
  func.func @transform_0(%arg0: i32) -> (i32, i32) {
    %c0_i32 = arith.constant 0 : i32
    %c0_i32_0 = arith.constant 0 : i32
    return %c0_i32, %arg0 : i32, i32
  }
  func.func @transform_1(%arg0: i32) -> (i32, i32) {
    %c0_i32 = arith.constant 0 : i32
    %c0_i32_0 = arith.constant 0 : i32
    return %c0_i32, %arg0 : i32, i32
  }
  func.func @transform_2(%arg0: i32) -> (i32, i32) {
    %c0_i32 = arith.constant 0 : i32
    %c0_i32_0 = arith.constant 0 : i32
    return %c0_i32, %arg0 : i32, i32
  }
  func.func @transform_3(%arg0: i32) -> (i32, i32) {
    %c0_i32 = arith.constant 0 : i32
    %c0_i32_0 = arith.constant 0 : i32
    return %c0_i32, %arg0 : i32, i32
  }
}

</mosaic_0001>

<bundles_post_ra>
// kernel: batch_norm.1
= control target key start
LH: loop header
LB: loop body
LE: loop exit
PB: predicated region body
PF: predicated region fallthrough
CT: control target
= control target key end

     0   :  { %8 = vsyncpa [#allocation3], 0  ;;  %s249_s0 = inlined_call_operand.hbm [shape: f32[16,256], index: 0, kind: input, shape index: {}]   ;;  %s250_s1 = inlined_call_operand.vmem [shape: f32[1,256], index: 1, kind: input, shape index: {}]   ;;  %s251_s2 = inlined_call_operand.vmem [shape: f32[1,256], index: 2, kind: input, shape index: {}]   ;;  %s252_s3 = inlined_call_operand.hbm [shape: f32[16,256], index: 3, kind: output, shape index: {}]  }
   0x1   :  { %9 = vsyncpa [#allocation4], 0  ;;  %s14_s14 = sshll.u32 %s249_s0, 4  ;;  %s207_s15 = smov [#allocation2]   ;;  %s15_s14 = int_to_ptr.hbm [resolvable:$true] %s14_s14 }
   0x2   :  { %s16_s16 = sshll.u32 %s207_s15, 4  ;;  %s208_s17 = smov 256   ;;  %s17_s16 = int_to_ptr.vmem [resolvable:$true] %s16_s16 }
   0x3   :  { %s209_s18 = smov 16  }
   0x4   :  { %22 = dma.hbm_to_vmem [thread:$0]  %s15_s14, 512, %s17_s16, [#allocation3], %s208_s17, %s208_s17, %s209_s18  }
   0x5   :  { %203 = dma.done.wait [#allocation3], 512  }
   0x6   :  { %204 = vsyncadd [#allocation3], 4294966784  ;;  %v31_v0 = vld [vmem:[#allocation2] sm:$0xff]  ;;  %v32_v1 = vld [vmem:[#allocation2 + $0x8] sm:$0xff]  ;;  %vm101_vm6 = vcmask 1040384   ;;  %s210_s22 = smov [#allocation5]  }
   0x7   :  { %v33_v2 = vld [vmem:[#allocation2 + $0x10] sm:$0xff]  ;;  %v34_v3 = vld [vmem:[#allocation2 + $0x18] sm:$0xff]  ;;  %v75_v60 = vld [vmem:[%s250_s1] sm:$0x3]  ;;  %s132_s1 = sshll.u32 %s210_s22, 4  ;;  %s134_s25 = sshll.u32 %s252_s3, 4  ;;  %s133_s1 = int_to_ptr.vmem [resolvable:$true] %s132_s1  ;;  %s135_s25 = int_to_ptr.hbm [resolvable:$true] %s134_s25 }
   0x8   :  { %v35_v4 = vadd.f32 %v33_v2, %v31_v0  ;;  %v42_v5 = vadd.f32 %v34_v3, %v32_v1  ;;  %v114_v63 = vld [vmem:[%s251_s2] sm:$0x3] }
   0xa   :  { %v36_v6 = vrot.slane %v35_v4, 4  ;;  %v43_v7 = vrot.slane %v42_v5, 4 }
   0xc   :  { %v37_v8 = vadd.f32 %v36_v6, %v35_v4  ;;  %v44_v9 = vadd.f32 %v43_v7, %v42_v5  ;;  %v117_v4 = vperm.slane %v114_v63, 1 }
   0xe   :  { %v38_v10 = vrot.slane %v37_v8, 2  ;;  %v45_v11 = vrot.slane %v44_v9, 2 }
  0x10   :  { %v39_v12 = vadd.f32 %v38_v10, %v37_v8  ;;  %v46_v13 = vadd.f32 %v45_v11, %v44_v9 }
  0x12   :  { %v40_v14 = vrot.slane %v39_v12, 1  ;;  %v47_v15 = vrot.slane %v46_v13, 1 }
  0x14   :  { %v41_v16 = vadd.f32 %v40_v14, %v39_v12  ;;  %v48_v17 = vadd.f32 %v47_v15, %v46_v13 }
  0x16   :  { %v49_v18 = vmul.f32 0.0625, %v41_v16  ;;  %v50_v19 = vmul.f32 0.0625, %v48_v17 }
  0x18   :  { %v51_v20 = vsub.f32 %v31_v0, %v49_v18  ;;  %v53_v21 = vsub.f32 %v33_v2, %v49_v18  ;;  %v52_v22 = vsub.f32 %v32_v1, %v50_v19  ;;  %v54_v23 = vsub.f32 %v34_v3, %v50_v19 }
  0x19   :  { %v116_v2 = vperm.slane %v114_v63, 0 }
  0x1a   :  { %v55_v24 = vmul.f32 %v51_v20, %v51_v20  ;;  %v57_v25 = vmul.f32 %v53_v21, %v53_v21  ;;  %v56_v26 = vmul.f32 %v52_v22, %v52_v22  ;;  %v58_v27 = vmul.f32 %v54_v23, %v54_v23 }
  0x1c   :  { %v59_v28 = vadd.f32 %v57_v25, %v55_v24  ;;  %v66_v29 = vadd.f32 %v58_v27, %v56_v26 }
  0x1e   :  { %v60_v30 = vrot.slane %v59_v28, 4  ;;  %v67_v31 = vrot.slane %v66_v29, 4 }
  0x20   :  { %v61_v32 = vadd.f32 %v60_v30, %v59_v28  ;;  %v68_v33 = vadd.f32 %v67_v31, %v66_v29 }
  0x22   :  { %v62_v34 = vrot.slane %v61_v32, 2  ;;  %v69_v35 = vrot.slane %v68_v33, 2 }
  0x24   :  { %v63_v36 = vadd.f32 %v62_v34, %v61_v32  ;;  %v70_v37 = vadd.f32 %v69_v35, %v68_v33 }
  0x26   :  { %v64_v38 = vrot.slane %v63_v36, 1  ;;  %v71_v39 = vrot.slane %v70_v37, 1 }
  0x28   :  { %v65_v40 = vadd.f32 %v64_v38, %v63_v36  ;;  %v72_v41 = vadd.f32 %v71_v39, %v70_v37 }
  0x2a   :  { %v73_v42 = vmul.f32 0.0625, %v65_v40  ;;  %v74_v43 = vmul.f32 0.0625, %v72_v41 }
  0x2c   :  { %v76_v44 = vadd.f32 1e-05, %v73_v42  ;;  %v77_v45 = vadd.f32 1e-05, %v74_v43 }
  0x2e   :  { %151 = vrsqrt.f32 %v76_v44  ;;  %vm84_vm0 = vweird.f32 %v76_v44  ;;  %vm94_vm2 = vweird.f32 %v77_v45 }
  0x2f   :  { %153 = vrsqrt.f32 %v77_v45 }
  0x34   :  { %v152_v46 = vpop.eup %151 }
  0x35   :  { %v154_v47 = vpop.eup %153  ;;  %v79_v48 = vmul.f32 %v152_v46, %v76_v44  ;;  %vm85_vm1 = vweird.f32 %v152_v46 }
  0x36   :  { %v89_v49 = vmul.f32 %v154_v47, %v77_v45  ;;  %vm95_vm3 = vweird.f32 %v154_v47  ;;  %vm86_vm4 = vmor %vm84_vm0, %vm85_vm1 }
  0x37   :  { %v80_v50 = vmul.f32 %v152_v46, %v79_v48  ;;  %vm96_vm5 = vmor %vm94_vm2, %vm95_vm3 }
  0x38   :  { %v90_v51 = vmul.f32 %v154_v47, %v89_v49 }
  0x39   :  { %v81_v52 = vmul.f32 0.5, %v80_v50 }
  0x3a   :  { %v91_v53 = vmul.f32 0.5, %v90_v51 }
  0x3b   :  { %v82_v54 = vsub.f32 1.5, %v81_v52 }
  0x3c   :  { %v92_v55 = vsub.f32 1.5, %v91_v53 }
  0x3d   :  { %v83_v56 = vmul.f32 %v152_v46, %v82_v54 }
  0x3e   :  { %v93_v57 = vmul.f32 %v154_v47, %v92_v55 }
  0x3f   :  { %v87_v58 = vsel %vm86_vm4, %v152_v46, %v83_v56 }
  0x40   :  { %v97_v59 = vsel %vm96_vm5, %v154_v47, %v93_v57 }
  0x41   :  { %v100_v61 = vrot.slane %v97_v59, 7 }
  0x43   :  { %v102_v62 = vsel %vm101_vm6, %v87_v58, %v100_v61 }
  0x44   :  { %v104_v0 = vmul.f32 %v102_v62, %v75_v60 }
  0x46   :  { %v106_v1 = vperm.slane %v104_v0, 0  ;;  %v107_v3 = vperm.slane %v104_v0, 1 }
  0x48   :  { %v110_v5 = vmul.f32 %v106_v1, %v51_v20  ;;  %v111_v6 = vmul.f32 %v107_v3, %v52_v22  ;;  %v112_v7 = vmul.f32 %v106_v1, %v53_v21  ;;  %v113_v8 = vmul.f32 %v107_v3, %v54_v23 }
  0x4a   :  { %v120_v9 = vadd.f32 %v116_v2, %v110_v5  ;;  %v121_v10 = vadd.f32 %v117_v4, %v111_v6  ;;  %v122_v11 = vadd.f32 %v116_v2, %v112_v7  ;;  %v123_v12 = vadd.f32 %v117_v4, %v113_v8 }
  0x4c   :  { %124 = vst [vmem:[#allocation5] sm:$0xff] %v120_v9 }
  0x4d   :  { %125 = vst [vmem:[#allocation5 + $0x8] sm:$0xff] %v121_v10 }
  0x4e   :  { %126 = vst [vmem:[#allocation5 + $0x10] sm:$0xff] %v122_v11 }
  0x4f   :  { %127 = vst [vmem:[#allocation5 + $0x18] sm:$0xff] %v123_v12 }
  0x50   :  { %140 = dma.vmem_to_hbm [thread:$0]  %s133_s1, 512, %s135_s25, [#allocation4], %s208_s17, %s208_s17, %s209_s18  }
  0x51   :  { %205 = dma.done.wait [#allocation4], 512  }
  0x52   :  { %206 = vsyncadd [#allocation4], 4294966784 }
  0x53   :  { %145 = vsyncpa [#allocation3], 1 }
  0x54   :  { %146 = vsyncpa [#allocation4], 1 }

</bundles_post_ra>
